<compile_context>
chip_gen: v5e
topology: v5e:2x2
jax: 0.10.0
libtpu: 0.0.40
codegen_flags: <defaults>
</compile_context>

<pallas_src>
import functools

import jax
import jax.numpy as jnp
from jax import lax
from jax.experimental import pallas as pl
from jax.experimental.pallas import tpu as pltpu

RMS_EPS = 1e-5


def _round_up(x: int, m: int) -> int:
    return ((x + m - 1) // m) * m


def _sublane_multiple(dtype) -> int:
    # Minimum second-minor tile granularity: 8 (4-byte), 16 (2-byte), 32 (1-byte).
    return max(8, 32 // jnp.dtype(dtype).itemsize)


def _largest_divisor_tile(total: int, cap: int, sub: int):
    """Largest d with d | total, d % sub == 0, d <= cap. None if no such d."""
    best = None
    d = sub
    cap = min(cap, total)
    while d <= cap:
        if total % d == 0:
            best = d
        d += sub
    return best


def bert_self_output_kernel(h_ref, x_ref, wt_ref, b_ref, g_ref, o_ref,
                            *, matmul_dtype=None):
    # h_ref: (TM, H) attention output tile, x_ref: (TM, H) residual tile
    # wt_ref: (H, H) dense weight, PRE-TRANSPOSED to (in_features, out_features)
    # b_ref: (1, H) dense bias, g_ref: (1, H) RMSNorm gamma, o_ref: (TM, H)
    h = h_ref[...]
    w = wt_ref[...]
    if matmul_dtype is not None:
        h = h.astype(matmul_dtype)
        w = w.astype(matmul_dtype)

    # dense: (TM, K) @ (K, N) with f32 accumulation on the MXU (K-major weight,
    # no transpose / relayout inside the kernel body).
    y = lax.dot_general(
        h, w,
        dimension_numbers=(((1,), (0,)), ((), ())),
        preferred_element_type=jnp.float32,
    )

    # dropout is identity in eval mode; fuse bias into the residual add.
    z = y + (x_ref[...].astype(jnp.float32) + b_ref[...].astype(jnp.float32))

    # RMSNorm over the hidden (lane) axis: mean -> XLU, rsqrt -> EUP (both off
    # the VPU/MXU critical slots), eps = 1e-5, then scale by gamma.
    ms = jnp.mean(z * z, axis=-1, keepdims=True)
    zn = z * lax.rsqrt(ms + RMS_EPS)
    o_ref[...] = (zn * g_ref[...].astype(jnp.float32)).astype(o_ref.dtype)


def bert_self_output(hidden_states, input_tensor, w_dense, b_dense, rms_weight,
                     *, block_tokens=1024, matmul_dtype=None,
                     vmem_budget_bytes=48 * 1024 * 1024):
    """hidden_states, input_tensor: (..., H). Returns same shape, dtype of input.

    w_dense is in PyTorch nn.Linear layout [out_features, in_features].
    matmul_dtype: optionally cast matmul operands (e.g. jnp.bfloat16 on v5e);
    accumulation and RMS statistics stay f32.
    """
    orig_shape = hidden_states.shape
    H = orig_shape[-1]
    out_dtype = hidden_states.dtype  # output follows the activation storage dtype

    h2 = hidden_states.reshape(-1, H)
    x2 = input_tensor.reshape(-1, H)
    T = h2.shape[0]

    # One-time (static parameter) transpose to K-major (in_features, out_features).
    w_kt = jnp.transpose(w_dense)
    if matmul_dtype is not None:
        w_kt = w_kt.astype(matmul_dtype)  # also halves weight HBM/VMEM bytes

    b2 = b_dense.reshape(1, H)
    g2 = rms_weight.reshape(1, H)

    act_isz = jnp.dtype(out_dtype).itemsize
    w_isz = jnp.dtype(w_kt.dtype).itemsize
    sub = _sublane_multiple(out_dtype)  # 8 for f32, 16 for bf16

    # Cap TM so double-buffered activations (h, x, out) + single-buffered weight
    # fit the per-core VMEM budget (v7x has only 64 MiB / TC).
    per_row_bytes = 3 * 2 * H * act_isz          # h + x + out, double-buffered
    w_bytes = H * H * w_isz                      # single-buffered weight
    avail = vmem_budget_bytes - w_bytes - (1 << 20)
    cap_rows = max(sub, (max(avail, per_row_bytes * sub) // per_row_bytes) // sub * sub)
    cap = max(sub, min(block_tokens, cap_rows))

    # Avoid pad/slice HBM traffic: pad only up to the sublane granularity when
    # strictly required, then pick TM as a divisor of the (aligned) token count.
    Tp = T if T % sub == 0 else _round_up(T, sub)
    TM = _largest_divisor_tile(Tp, cap, sub)
    if TM is None:  # cannot happen (sub | Tp), defensive only
        TM = sub
    # Megacore: if everything fits in one tile but the problem is sizeable,
    # split so both TensorCores (v7x) get work under dimension_semantics.
    if Tp // TM == 1 and Tp >= 256:
        half = _largest_divisor_tile(Tp, max(sub, Tp // 2), sub)
        if half is not None:
            TM = half

    if Tp != T:
        pad = Tp - T  # < sub rows; zero rows are per-row RMSNorm'd and sliced off
        h2 = jnp.pad(h2, ((0, pad), (0, 0)))
        x2 = jnp.pad(x2, ((0, pad), (0, 0)))

    # Explicit VMEM limit matching the actual footprint (clamped to v7x physical).
    vmem_needed = per_row_bytes * TM + w_bytes + 4 * H * 4 + (1 << 20)
    vmem_limit = int(min(max(vmem_needed, 16 << 20), 64 << 20))

    kernel = functools.partial(bert_self_output_kernel, matmul_dtype=matmul_dtype)

    def _resident_spec(shape, single_buffer):
        imap = lambda i: (0, 0)
        if single_buffer:
            # Grid-invariant operand: one VMEM copy, DMA'd once.
            return pl.BlockSpec(shape, imap, pipeline_mode=pl.Buffered(1))
        return pl.BlockSpec(shape, imap)

    def _call(single_buffer):
        return pl.pallas_call(
            kernel,
            out_shape=jax.ShapeDtypeStruct((Tp, H), out_dtype),
            grid=(Tp // TM,),
            in_specs=[
                pl.BlockSpec((TM, H), lambda i: (i, 0)),   # hidden_states tile
                pl.BlockSpec((TM, H), lambda i: (i, 0)),   # residual tile
                _resident_spec((H, H), single_buffer),     # dense weight (K-major)
                _resident_spec((1, H), single_buffer),     # dense bias
                _resident_spec((1, H), single_buffer),     # rmsnorm gamma
            ],
            out_specs=pl.BlockSpec((TM, H), lambda i: (i, 0)),
            compiler_params=pltpu.CompilerParams(
                dimension_semantics=("parallel",),         # megacore sharding
                vmem_limit_bytes=vmem_limit),
        )(h2, x2, w_kt, b2, g2)

    try:
        out = _call(True)
    except Exception:
        # Fallback for Pallas versions that reject pl.Buffered(1) on a BlockSpec;
        # default double-buffering is functionally identical.
        out = _call(False)

    if Tp != T:
        out = out[:T]
    return out.reshape(orig_shape)


def reference(hidden_states, input_tensor, w_dense, b_dense, rms_weight):
    y = hidden_states @ w_dense.T + b_dense
    z = y + input_tensor
    zf = z.astype(jnp.float32)
    ms = jnp.mean(zf * zf, axis=-1, keepdims=True)
    zn = zf * lax.rsqrt(ms + RMS_EPS)
    return (zn * rms_weight).astype(hidden_states.dtype)


if __name__ == "__main__":
    B, S, H = 2, 8, 128  # small shapes; hidden kept lane-aligned (128)
    key = jax.random.PRNGKey(0)
    k1, k2, k3, k4, k5 = jax.random.split(key, 5)

    hidden_states = jax.random.normal(k1, (B, S, H), dtype=jnp.float32)
    input_tensor = jax.random.normal(k2, (B, S, H), dtype=jnp.float32)

    # deterministic synthetic parameters (PyTorch Linear layout: [out, in])
    w_dense = jax.random.normal(k3, (H, H), dtype=jnp.float32) * (1.0 / jnp.sqrt(H))
    b_dense = jax.random.normal(k4, (H,), dtype=jnp.float32) * 0.02
    rms_weight = jnp.ones((H,), dtype=jnp.float32) + \
        0.01 * jax.random.normal(k5, (H,), dtype=jnp.float32)

    out = bert_self_output(hidden_states, input_tensor, w_dense, b_dense, rms_weight)
    out = jax.block_until_ready(out)

    ref = reference(hidden_states, input_tensor, w_dense, b_dense, rms_weight)
    assert out.shape == (B, S, H)
    assert out.dtype == hidden_states.dtype
    assert jnp.allclose(out, ref, atol=1e-4, rtol=1e-4), "mismatch vs reference"

    # TODO(synk): training-mode dropout (hidden_dropout_prob > 0) not implemented;
    # eval-mode identity matches the spec's forward used here.
    print("KERNEL_OK")
</pallas_src>

<mosaic_0001>
module attributes {stable_mosaic.version = 11 : i64} {
  func.func @bert_self_output_kernel(%arg0: i32, %arg1: memref<16x128xf32, #tpu.memory_space<vmem>>, %arg2: memref<16x128xf32, #tpu.memory_space<vmem>>, %arg3: memref<128x128xf32, #tpu.memory_space<vmem>>, %arg4: memref<1x128xf32, #tpu.memory_space<vmem>>, %arg5: memref<1x128xf32, #tpu.memory_space<vmem>>, %arg6: memref<16x128xf32, #tpu.memory_space<vmem>>) attributes {dimension_semantics = [#tpu.dimension_semantics<parallel>], iteration_bounds = array<i64: 1>, scalar_prefetch = 0 : i64, scratch_operands = 0 : i64, tpu.core_type = #tpu.core_type<tc>, window_params = [{transform_indices = @transform_0, window_bounds = array<i64: 16, 128>}, {transform_indices = @transform_1, window_bounds = array<i64: 16, 128>}, {pipeline_mode = #tpu.pipeline_mode<synchronous>, transform_indices = @transform_2, window_bounds = array<i64: 128, 128>}, {pipeline_mode = #tpu.pipeline_mode<synchronous>, transform_indices = @transform_3, window_bounds = array<i64: 1, 128>}, {pipeline_mode = #tpu.pipeline_mode<synchronous>, transform_indices = @transform_4, window_bounds = array<i64: 1, 128>}, {transform_indices = @transform_5, window_bounds = array<i64: 16, 128>}]} {
    %c0 = arith.constant 0 : index
    %c0_0 = arith.constant 0 : index
    %0 = vector.load %arg1[%c0, %c0_0] : memref<16x128xf32, #tpu.memory_space<vmem>>, vector<16x128xf32>
    %c0_1 = arith.constant 0 : index
    %c0_2 = arith.constant 0 : index
    %1 = vector.load %arg3[%c0_1, %c0_2] : memref<128x128xf32, #tpu.memory_space<vmem>>, vector<128x128xf32>
    %cst = arith.constant dense<0.000000e+00> : vector<16x128xf32>
    %2 = tpu.matmul %0, %1, %cst {dimension_numbers = #tpu.dot_dimension_numbers<[1], [0], [0], [1], [0, 0, 1, 1], [], []>} : vector<16x128xf32>, vector<128x128xf32>, vector<16x128xf32> -> vector<16x128xf32>
    %c0_3 = arith.constant 0 : index
    %c0_4 = arith.constant 0 : index
    %3 = vector.load %arg2[%c0_3, %c0_4] : memref<16x128xf32, #tpu.memory_space<vmem>>, vector<16x128xf32>
    %c0_5 = arith.constant 0 : index
    %c0_6 = arith.constant 0 : index
    %4 = vector.load %arg4[%c0_5, %c0_6] : memref<1x128xf32, #tpu.memory_space<vmem>>, vector<1x128xf32>
    %5 = vector.broadcast %4 : vector<1x128xf32> to vector<16x128xf32>
    %6 = arith.addf %3, %5 : vector<16x128xf32>
    %7 = arith.addf %2, %6 : vector<16x128xf32>
    %8 = arith.mulf %7, %7 : vector<16x128xf32>
    %cst_7 = arith.constant dense<0.000000e+00> : vector<16xf32>
    %9 = vector.multi_reduction <add>, %8, %cst_7 [1] : vector<16x128xf32> to vector<16xf32>
    %10 = vector.shape_cast %9 : vector<16xf32> to vector<16x1xf32>
    %cst_8 = arith.constant 1.280000e+02 : f32
    %11 = vector.broadcast %cst_8 : f32 to vector<16x1xf32>
    %12 = arith.divf %10, %11 : vector<16x1xf32>
    %cst_9 = arith.constant 9.99999974E-6 : f32
    %13 = vector.broadcast %cst_9 : f32 to vector<16x1xf32>
    %14 = arith.addf %12, %13 : vector<16x1xf32>
    %15 = math.rsqrt %14 : vector<16x1xf32>
    %16 = vector.broadcast %15 : vector<16x1xf32> to vector<16x128xf32>
    %17 = arith.mulf %7, %16 : vector<16x128xf32>
    %c0_10 = arith.constant 0 : index
    %c0_11 = arith.constant 0 : index
    %18 = vector.load %arg5[%c0_10, %c0_11] : memref<1x128xf32, #tpu.memory_space<vmem>>, vector<1x128xf32>
    %19 = vector.broadcast %18 : vector<1x128xf32> to vector<16x128xf32>
    %20 = arith.mulf %17, %19 : vector<16x128xf32>
    %c0_12 = arith.constant 0 : index
    %c0_13 = arith.constant 0 : index
    %21 = vector.load %arg6[%c0_12, %c0_13] : memref<16x128xf32, #tpu.memory_space<vmem>>, vector<16x128xf32>
    tpu.vector_store %arg6[%c0_12, %c0_13], %20 {strides = array<i32>} : memref<16x128xf32, #tpu.memory_space<vmem>>, vector<16x128xf32>,
    return
  }
  func.func @transform_0(%arg0: i32) -> (i32, i32) {
    %c0_i32 = arith.constant 0 : i32
    %c0_i32_0 = arith.constant 0 : i32
    return %arg0, %c0_i32 : i32, i32
  }
  func.func @transform_1(%arg0: i32) -> (i32, i32) {
    %c0_i32 = arith.constant 0 : i32
    %c0_i32_0 = arith.constant 0 : i32
    return %arg0, %c0_i32 : i32, i32
  }
  func.func @transform_2(%arg0: i32) -> (i32, i32) {
    %c0_i32 = arith.constant 0 : i32
    %c0_i32_0 = arith.constant 0 : i32
    %c0_i32_1 = arith.constant 0 : i32
    return %c0_i32, %c0_i32_0 : i32, i32
  }
  func.func @transform_3(%arg0: i32) -> (i32, i32) {
    %c0_i32 = arith.constant 0 : i32
    %c0_i32_0 = arith.constant 0 : i32
    %c0_i32_1 = arith.constant 0 : i32
    return %c0_i32, %c0_i32_0 : i32, i32
  }
  func.func @transform_4(%arg0: i32) -> (i32, i32) {
    %c0_i32 = arith.constant 0 : i32
    %c0_i32_0 = arith.constant 0 : i32
    %c0_i32_1 = arith.constant 0 : i32
    return %c0_i32, %c0_i32_0 : i32, i32
  }
  func.func @transform_5(%arg0: i32) -> (i32, i32) {
    %c0_i32 = arith.constant 0 : i32
    %c0_i32_0 = arith.constant 0 : i32
    return %arg0, %c0_i32 : i32, i32
  }
}

module attributes {stable_mosaic.version = 11 : i64} {
  func.func @bert_self_output_kernel(%arg0: i32, %arg1: memref<16x128xf32, #tpu.memory_space<vmem>>, %arg2: memref<16x128xf32, #tpu.memory_space<vmem>>, %arg3: memref<128x128xf32, #tpu.memory_space<vmem>>, %arg4: memref<1x128xf32, #tpu.memory_space<vmem>>, %arg5: memref<1x128xf32, #tpu.memory_space<vmem>>, %arg6: memref<16x128xf32, #tpu.memory_space<vmem>>) attributes {dimension_semantics = [#tpu.dimension_semantics<parallel>], iteration_bounds = array<i64: 1>, scalar_prefetch = 0 : i64, scratch_operands = 0 : i64, tpu.core_type = #tpu.core_type<tc>, window_params = [{transform_indices = @transform_0, window_bounds = array<i64: 16, 128>}, {transform_indices = @transform_1, window_bounds = array<i64: 16, 128>}, {pipeline_mode = #tpu.pipeline_mode<synchronous>, transform_indices = @transform_2, window_bounds = array<i64: 128, 128>}, {pipeline_mode = #tpu.pipeline_mode<synchronous>, transform_indices = @transform_3, window_bounds = array<i64: 1, 128>}, {pipeline_mode = #tpu.pipeline_mode<synchronous>, transform_indices = @transform_4, window_bounds = array<i64: 1, 128>}, {transform_indices = @transform_5, window_bounds = array<i64: 16, 128>}]} {
    %c0 = arith.constant 0 : index
    %c0_0 = arith.constant 0 : index
    %0 = vector.load %arg1[%c0, %c0_0] : memref<16x128xf32, #tpu.memory_space<vmem>>, vector<16x128xf32>
    %c0_1 = arith.constant 0 : index
    %c0_2 = arith.constant 0 : index
    %1 = vector.load %arg3[%c0_1, %c0_2] : memref<128x128xf32, #tpu.memory_space<vmem>>, vector<128x128xf32>
    %cst = arith.constant dense<0.000000e+00> : vector<16x128xf32>
    %2 = tpu.matmul %0, %1, %cst {dimension_numbers = #tpu.dot_dimension_numbers<[1], [0], [0], [1], [0, 0, 1, 1], [], []>} : vector<16x128xf32>, vector<128x128xf32>, vector<16x128xf32> -> vector<16x128xf32>
    %c0_3 = arith.constant 0 : index
    %c0_4 = arith.constant 0 : index
    %3 = vector.load %arg2[%c0_3, %c0_4] : memref<16x128xf32, #tpu.memory_space<vmem>>, vector<16x128xf32>
    %c0_5 = arith.constant 0 : index
    %c0_6 = arith.constant 0 : index
    %4 = vector.load %arg4[%c0_5, %c0_6] : memref<1x128xf32, #tpu.memory_space<vmem>>, vector<1x128xf32>
    %5 = vector.broadcast %4 : vector<1x128xf32> to vector<16x128xf32>
    %6 = arith.addf %3, %5 : vector<16x128xf32>
    %7 = arith.addf %2, %6 : vector<16x128xf32>
    %8 = arith.mulf %7, %7 : vector<16x128xf32>
    %cst_7 = arith.constant dense<0.000000e+00> : vector<16xf32>
    %9 = vector.multi_reduction <add>, %8, %cst_7 [1] : vector<16x128xf32> to vector<16xf32>
    %10 = vector.shape_cast %9 : vector<16xf32> to vector<16x1xf32>
    %cst_8 = arith.constant 1.280000e+02 : f32
    %11 = vector.broadcast %cst_8 : f32 to vector<16x1xf32>
    %12 = arith.divf %10, %11 : vector<16x1xf32>
    %cst_9 = arith.constant 9.99999974E-6 : f32
    %13 = vector.broadcast %cst_9 : f32 to vector<16x1xf32>
    %14 = arith.addf %12, %13 : vector<16x1xf32>
    %15 = math.rsqrt %14 : vector<16x1xf32>
    %16 = vector.broadcast %15 : vector<16x1xf32> to vector<16x128xf32>
    %17 = arith.mulf %7, %16 : vector<16x128xf32>
    %c0_10 = arith.constant 0 : index
    %c0_11 = arith.constant 0 : index
    %18 = vector.load %arg5[%c0_10, %c0_11] : memref<1x128xf32, #tpu.memory_space<vmem>>, vector<1x128xf32>
    %19 = vector.broadcast %18 : vector<1x128xf32> to vector<16x128xf32>
    %20 = arith.mulf %17, %19 : vector<16x128xf32>
    %c0_12 = arith.constant 0 : index
    %c0_13 = arith.constant 0 : index
    %21 = vector.load %arg6[%c0_12, %c0_13] : memref<16x128xf32, #tpu.memory_space<vmem>>, vector<16x128xf32>
    tpu.vector_store %arg6[%c0_12, %c0_13], %20 {strides = array<i32>} : memref<16x128xf32, #tpu.memory_space<vmem>>, vector<16x128xf32>,
    return
  }
  func.func @transform_0(%arg0: i32) -> (i32, i32) {
    %c0_i32 = arith.constant 0 : i32
    %c0_i32_0 = arith.constant 0 : i32
    return %arg0, %c0_i32 : i32, i32
  }
  func.func @transform_1(%arg0: i32) -> (i32, i32) {
    %c0_i32 = arith.constant 0 : i32
    %c0_i32_0 = arith.constant 0 : i32
    return %arg0, %c0_i32 : i32, i32
  }
  func.func @transform_2(%arg0: i32) -> (i32, i32) {
    %c0_i32 = arith.constant 0 : i32
    %c0_i32_0 = arith.constant 0 : i32
    %c0_i32_1 = arith.constant 0 : i32
    return %c0_i32, %c0_i32_0 : i32, i32
  }
  func.func @transform_3(%arg0: i32) -> (i32, i32) {
    %c0_i32 = arith.constant 0 : i32
    %c0_i32_0 = arith.constant 0 : i32
    %c0_i32_1 = arith.constant 0 : i32
    return %c0_i32, %c0_i32_0 : i32, i32
  }
  func.func @transform_4(%arg0: i32) -> (i32, i32) {
    %c0_i32 = arith.constant 0 : i32
    %c0_i32_0 = arith.constant 0 : i32
    %c0_i32_1 = arith.constant 0 : i32
    return %c0_i32, %c0_i32_0 : i32, i32
  }
  func.func @transform_5(%arg0: i32) -> (i32, i32) {
    %c0_i32 = arith.constant 0 : i32
    %c0_i32_0 = arith.constant 0 : i32
    return %arg0, %c0_i32 : i32, i32
  }
}

</mosaic_0001>

<bundles_post_ra>
// kernel: tpu_custom_call.1
= control target key start
LH: loop header
LB: loop body
LE: loop exit
PB: predicated region body
PF: predicated region fallthrough
CT: control target
= control target key end

     0   :  { %10 = vsyncpa [#allocation3], 0  ;;  %s384_s0 = inlined_call_operand.hbm [shape: f32[16,128], index: 0, kind: input, shape index: {}]   ;;  %s385_s1 = inlined_call_operand.hbm [shape: f32[16,128], index: 1, kind: input, shape index: {}]   ;;  %s386_s2 = inlined_call_operand.hbm [shape: f32[128,128], index: 2, kind: input, shape index: {}]   ;;  %s387_s3 = inlined_call_operand.vmem [shape: f32[1,128], index: 3, kind: input, shape index: {}]   ;;  %s388_s4 = inlined_call_operand.vmem [shape: f32[1,128], index: 4, kind: input, shape index: {}]   ;;  %s389_s5 = inlined_call_operand.hbm [shape: f32[16,128], index: 5, kind: output, shape index: {}]  }
   0x1   :  { %11 = vsyncpa [#allocation6], 0 }
   0x2   :  { %12 = vsyncpa [#allocation4], 0  ;;  %s30_s20 = sshll.u32 %s385_s1, 4  ;;  %s317_s21 = smov [#allocation5]   ;;  %s31_s20 = int_to_ptr.hbm [resolvable:$true] %s30_s20 }
   0x3   :  { %s32_s22 = sshll.u32 %s317_s21, 4  ;;  %s17_s25 = sshll.u32 %s384_s0, 4  ;;  %s33_s22 = int_to_ptr.vmem [resolvable:$true] %s32_s22  ;;  %s18_s25 = int_to_ptr.hbm [resolvable:$true] %s17_s25 }
   0x4   :  { %s318_s26 = smov 128   ;;  %s319_s27 = smov 8  }
   0x5   :  { %38 = dma.hbm_to_vmem [thread:$0]  %s31_s20, 256, %s33_s22, [#allocation6], %s318_s26, %s318_s26, %s319_s27  }
   0x6   :  { %s320_s28 = smov [#allocation2]   ;;  %s43_s1 = sshll.u32 %s386_s2, 4  ;;  %s44_s1 = int_to_ptr.hbm [resolvable:$true] %s43_s1 }
   0x7   :  { %s19_s29 = sshll.u32 %s320_s28, 4  ;;  %s321_s0 = smov [#allocation7]   ;;  %s20_s29 = int_to_ptr.vmem [resolvable:$true] %s19_s29 }
   0x8   :  { %25 = dma.hbm_to_vmem [thread:$0]  %s18_s25, 256, %s20_s29, [#allocation3], %s318_s26, %s318_s26, %s319_s27  }
   0x9   :  { %s45_s7 = sshll.u32 %s321_s0, 4  ;;  %s46_s7 = int_to_ptr.vmem [resolvable:$true] %s45_s7 }
   0xa   :  { %51 = dma.hbm_to_vmem [thread:$0]  %s44_s1, 2048, %s46_s7, [#allocation6], %s318_s26, %s318_s26, %s319_s27  }
   0xb   :  { %311 = dma.done.wait [#allocation3], 256  }
   0xc   :  { %312 = vsyncadd [#allocation3], 4294967040 }
   0xd   :  { %313 = dma.done.wait [#allocation6], 2304  }
   0xe   :  { %314 = vsyncadd [#allocation6], 4294964992  ;;  %v85_v0 = vld [vmem:[#allocation7 + $0x78] sm:$0xff]  ;;  %v84_v1 = vld [vmem:[#allocation7 + $0x70] sm:$0xff]  ;;  %v322_v29 = vmov 128.0   ;;  %s323_s10 = smov [#allocation8]  }
   0xf   :  { %94 = vmatpush.msra.mxu0 %v85_v0  ;;  %184 = vmatpush.msra.mxu1 %v85_v0  ;;  %v83_v2 = vld [vmem:[#allocation7 + $0x68] sm:$0xff]  ;;  %v82_v3 = vld [vmem:[#allocation7 + $0x60] sm:$0xff]  ;;  %v81_v4 = vld [vmem:[#allocation7 + $0x58] sm:$0xff]  ;;  %209 = vrcp.f32 %v322_v29  ;;  %s168_s11 = sshll.u32 %s323_s10, 4  ;;  %s170_s14 = sshll.u32 %s389_s5, 4  ;;  %s169_s11 = int_to_ptr.vmem [resolvable:$true] %s168_s11  ;;  %s171_s14 = int_to_ptr.hbm [resolvable:$true] %s170_s14 }
  0x10   :  { %v80_v5 = vld [vmem:[#allocation7 + $0x50] sm:$0xff]  ;;  %v79_v6 = vld [vmem:[#allocation7 + $0x48] sm:$0xff]  ;;  %v78_v7 = vld [vmem:[#allocation7 + $0x40] sm:$0xff] }
  0x11   :  { %95 = vmatpush.msra.mxu0 %v84_v1  ;;  %185 = vmatpush.msra.mxu1 %v84_v1  ;;  %v77_v8 = vld [vmem:[#allocation7 + $0x38] sm:$0xff]  ;;  %v76_v9 = vld [vmem:[#allocation7 + $0x30] sm:$0xff]  ;;  %v75_v10 = vld [vmem:[#allocation7 + $0x28] sm:$0xff] }
  0x12   :  { %v74_v11 = vld [vmem:[#allocation7 + $0x20] sm:$0xff]  ;;  %v73_v12 = vld [vmem:[#allocation7 + $0x18] sm:$0xff]  ;;  %v72_v13 = vld [vmem:[#allocation7 + $0x10] sm:$0xff] }
  0x13   :  { %96 = vmatpush.msra.mxu0 %v83_v2  ;;  %186 = vmatpush.msra.mxu1 %v83_v2  ;;  %v71_v14 = vld [vmem:[#allocation7 + $0x8] sm:$0xff]  ;;  %v70_v15 = vld [vmem:[#allocation7] sm:$0xff]  ;;  %v86_v19 = vld [vmem:[#allocation5] sm:$0xff] }
  0x14   :  { %v68_v16 = vld [vmem:[#allocation2] sm:$0xff]  ;;  %v69_v17 = vld [vmem:[#allocation2 + $0x8] sm:$0xff]  ;;  %v87_v21 = vld [vmem:[#allocation5 + $0x8] sm:$0xff] }
  0x15   :  { %97 = vmatpush.msra.mxu0 %v82_v3  ;;  %187 = vmatpush.msra.mxu1 %v82_v3  ;;  %v207_v18 = vld [vmem:[%s387_s3] ss:$0 sm:$0xff]  ;;  %v210_v30 = vpop.eup %209 }
  0x16   :  { %v92_v20 = vadd.f32 %v207_v18, %v86_v19  ;;  %v93_v24 = vadd.f32 %v207_v18, %v87_v21  ;;  %v124_v31 = vmul.f32 128.0, %v210_v30  ;;  %vm128_vm0 = vweird.f32 %v210_v30  ;;  %v208_v50 = vld [vmem:[%s388_s4] ss:$0 sm:$0xff] }
  0x17   :  { %98 = vmatpush.msra.mxu0 %v81_v4  ;;  %188 = vmatpush.msra.mxu1 %v81_v4 }
  0x18   :  { %v125_v32 = vsub.f32 1.0, %v124_v31 }
  0x19   :  { %99 = vmatpush.msra.mxu0 %v80_v5  ;;  %189 = vmatpush.msra.mxu1 %v80_v5 }
  0x1a   :  { %v126_v33 = vmul.f32 %v210_v30, %v125_v32 }
  0x1b   :  { %100 = vmatpush.msra.mxu0 %v79_v6  ;;  %190 = vmatpush.msra.mxu1 %v79_v6 }
  0x1c   :  { %v127_v34 = vadd.f32 %v210_v30, %v126_v33 }
  0x1d   :  { %101 = vmatpush.msra.mxu0 %v78_v7  ;;  %191 = vmatpush.msra.mxu1 %v78_v7 }
  0x1e   :  { %v129_v35 = vsel %vm128_vm0, %v210_v30, %v127_v34 }
  0x1f   :  { %102 = vmatpush.msra.mxu0 %v77_v8  ;;  %192 = vmatpush.msra.mxu1 %v77_v8 }
  0x21   :  { %103 = vmatpush.msra.mxu0 %v76_v9  ;;  %193 = vmatpush.msra.mxu1 %v76_v9 }
  0x23   :  { %104 = vmatpush.msra.mxu0 %v75_v10  ;;  %194 = vmatpush.msra.mxu1 %v75_v10 }
  0x25   :  { %105 = vmatpush.msra.mxu0 %v74_v11  ;;  %195 = vmatpush.msra.mxu1 %v74_v11 }
  0x27   :  { %106 = vmatpush.msra.mxu0 %v73_v12  ;;  %196 = vmatpush.msra.mxu1 %v73_v12 }
  0x29   :  { %107 = vmatpush.msra.mxu0 %v72_v13  ;;  %197 = vmatpush.msra.mxu1 %v72_v13 }
  0x2b   :  { %108 = vmatpush.msra.mxu0 %v71_v14  ;;  %198 = vmatpush.msra.mxu1 %v71_v14 }
  0x2d   :  { %109 = vmatpush.msra.mxu0 %v70_v15  ;;  %199 = vmatpush.msra.mxu1 %v70_v15 }
  0x2e   :  { %110 = vmatmul.f32.vlgmr.msra.gmra.mxu0 %v68_v16  ;;  %113 = vmatmul.f32.vlgmr.msra.gmra.mxu1 %v69_v17 }
  0xab   :  { %v111_v22 = vpop.f32.mrf.mxu0  ;;  %v114_v25 = vpop.f32.mrf.mxu1 }
  0xac   :  { %v112_v23 = vadd.f32 %v111_v22, %v92_v20  ;;  %v115_v27 = vadd.f32 %v114_v25, %v93_v24 }
  0xae   :  { %v117_v26 = vmul.f32 %v112_v23, %v112_v23  ;;  %v118_v28 = vmul.f32 %v115_v27, %v115_v27 }
  0xb0   :  { %119 = vadd.xlane.f32.xlu0 %v117_v26 }
  0xb8   :  { %121 = vadd.xlane.f32.xlu0 %v118_v28 }
 0x123   :  { %v120_v36 = vpop.xlane.xlu0 %119 }
 0x124   :  { %v130_v37 = vmul.f32 %v129_v35, %v120_v36 }
 0x126   :  { %v132_v38 = vadd.f32 1e-05, %v130_v37 }
 0x128   :  { %211 = vrsqrt.f32 %v132_v38  ;;  %vm140_vm2 = vweird.f32 %v132_v38 }
 0x12b   :  { %v122_v39 = vpop.xlane.xlu0 %121 }
 0x12c   :  { %v131_v40 = vmul.f32 %v129_v35, %v122_v39 }
 0x12e   :  { %v212_v41 = vpop.eup %211  ;;  %v133_v42 = vadd.f32 1e-05, %v131_v40 }
 0x12f   :  { %v135_v43 = vmul.f32 %v212_v41, %v132_v38  ;;  %vm141_vm1 = vweird.f32 %v212_v41 }
 0x130   :  { %213 = vrsqrt.f32 %v133_v42  ;;  %vm142_vm3 = vmor %vm140_vm2, %vm141_vm1  ;;  %vm150_vm5 = vweird.f32 %v133_v42 }
 0x131   :  { %v136_v44 = vmul.f32 %v212_v41, %v135_v43 }
 0x133   :  { %v137_v45 = vmul.f32 0.5, %v136_v44 }
 0x135   :  { %v138_v46 = vsub.f32 1.5, %v137_v45 }
 0x136   :  { %v214_v47 = vpop.eup %213 }
 0x137   :  { %v139_v48 = vmul.f32 %v212_v41, %v138_v46  ;;  %v145_v49 = vmul.f32 %v214_v47, %v133_v42  ;;  %vm151_vm4 = vweird.f32 %v214_v47 }
 0x138   :  { %vm152_vm6 = vmor %vm150_vm5, %vm151_vm4 }
 0x139   :  { %v143_v51 = vsel %vm142_vm3, %v212_v41, %v139_v48  ;;  %v146_v52 = vmul.f32 %v214_v47, %v145_v49 }
 0x13a   :  { %v154_v53 = vmul.f32 %v143_v51, %v112_v23 }
 0x13b   :  { %v147_v54 = vmul.f32 0.5, %v146_v52 }
 0x13c   :  { %v160_v55 = vmul.f32 %v208_v50, %v154_v53 }
 0x13d   :  { %v148_v56 = vsub.f32 1.5, %v147_v54 }
 0x13e   :  { %162 = vst [vmem:[#allocation8] sm:$0xff] %v160_v55 }
 0x13f   :  { %v149_v57 = vmul.f32 %v214_v47, %v148_v56 }
 0x141   :  { %v153_v58 = vsel %vm152_vm6, %v214_v47, %v149_v57 }
 0x142   :  { %v155_v59 = vmul.f32 %v153_v58, %v115_v27 }
 0x144   :  { %v161_v60 = vmul.f32 %v208_v50, %v155_v59 }
 0x146   :  { %163 = vst [vmem:[#allocation8 + $0x8] sm:$0xff] %v161_v60 }
 0x147   :  { %176 = dma.vmem_to_hbm [thread:$0]  %s169_s11, 256, %s171_s14, [#allocation4], %s318_s26, %s318_s26, %s319_s27  }
 0x148   :  { %315 = dma.done.wait [#allocation4], 256  }
 0x149   :  { %316 = vsyncadd [#allocation4], 4294967040 }
 0x14a   :  { %181 = vsyncpa [#allocation3], 1 }
 0x14b   :  { %182 = vsyncpa [#allocation6], 1 }
 0x14c   :  { %183 = vsyncpa [#allocation4], 1 }

// kernel: tpu_custom_call.1
= control target key start
LH: loop header
LB: loop body
LE: loop exit
PB: predicated region body
PF: predicated region fallthrough
CT: control target
= control target key end

     0   :  { %10 = vsyncpa [#allocation3], 0  ;;  %s384_s0 = inlined_call_operand.hbm [shape: f32[16,128], index: 0, kind: input, shape index: {}]   ;;  %s385_s1 = inlined_call_operand.hbm [shape: f32[16,128], index: 1, kind: input, shape index: {}]   ;;  %s386_s2 = inlined_call_operand.hbm [shape: f32[128,128], index: 2, kind: input, shape index: {}]   ;;  %s387_s3 = inlined_call_operand.vmem [shape: f32[1,128], index: 3, kind: input, shape index: {}]   ;;  %s388_s4 = inlined_call_operand.vmem [shape: f32[1,128], index: 4, kind: input, shape index: {}]   ;;  %s389_s5 = inlined_call_operand.hbm [shape: f32[16,128], index: 5, kind: output, shape index: {}]  }
   0x1   :  { %11 = vsyncpa [#allocation6], 0 }
   0x2   :  { %12 = vsyncpa [#allocation4], 0  ;;  %s30_s20 = sshll.u32 %s385_s1, 4  ;;  %s317_s21 = smov [#allocation5]   ;;  %s31_s20 = int_to_ptr.hbm [resolvable:$true] %s30_s20 }
   0x3   :  { %s32_s22 = sshll.u32 %s317_s21, 4  ;;  %s17_s25 = sshll.u32 %s384_s0, 4  ;;  %s33_s22 = int_to_ptr.vmem [resolvable:$true] %s32_s22  ;;  %s18_s25 = int_to_ptr.hbm [resolvable:$true] %s17_s25 }
   0x4   :  { %s318_s26 = smov 128   ;;  %s319_s27 = smov 8  }
   0x5   :  { %38 = dma.hbm_to_vmem [thread:$0]  %s31_s20, 256, %s33_s22, [#allocation6], %s318_s26, %s318_s26, %s319_s27  }
   0x6   :  { %s320_s28 = smov [#allocation2]   ;;  %s43_s1 = sshll.u32 %s386_s2, 4  ;;  %s44_s1 = int_to_ptr.hbm [resolvable:$true] %s43_s1 }
   0x7   :  { %s19_s29 = sshll.u32 %s320_s28, 4  ;;  %s321_s0 = smov [#allocation7]   ;;  %s20_s29 = int_to_ptr.vmem [resolvable:$true] %s19_s29 }
   0x8   :  { %25 = dma.hbm_to_vmem [thread:$0]  %s18_s25, 256, %s20_s29, [#allocation3], %s318_s26, %s318_s26, %s319_s27  }
   0x9   :  { %s45_s7 = sshll.u32 %s321_s0, 4  ;;  %s46_s7 = int_to_ptr.vmem [resolvable:$true] %s45_s7 }
   0xa   :  { %51 = dma.hbm_to_vmem [thread:$0]  %s44_s1, 2048, %s46_s7, [#allocation6], %s318_s26, %s318_s26, %s319_s27  }
   0xb   :  { %311 = dma.done.wait [#allocation3], 256  }
   0xc   :  { %312 = vsyncadd [#allocation3], 4294967040 }
   0xd   :  { %313 = dma.done.wait [#allocation6], 2304  }
   0xe   :  { %314 = vsyncadd [#allocation6], 4294964992  ;;  %v85_v0 = vld [vmem:[#allocation7 + $0x78] sm:$0xff]  ;;  %v84_v1 = vld [vmem:[#allocation7 + $0x70] sm:$0xff]  ;;  %v322_v29 = vmov 128.0   ;;  %s323_s10 = smov [#allocation8]  }
   0xf   :  { %94 = vmatpush.msra.mxu0 %v85_v0  ;;  %184 = vmatpush.msra.mxu1 %v85_v0  ;;  %v83_v2 = vld [vmem:[#allocation7 + $0x68] sm:$0xff]  ;;  %v82_v3 = vld [vmem:[#allocation7 + $0x60] sm:$0xff]  ;;  %v81_v4 = vld [vmem:[#allocation7 + $0x58] sm:$0xff]  ;;  %209 = vrcp.f32 %v322_v29  ;;  %s168_s11 = sshll.u32 %s323_s10, 4  ;;  %s170_s14 = sshll.u32 %s389_s5, 4  ;;  %s169_s11 = int_to_ptr.vmem [resolvable:$true] %s168_s11  ;;  %s171_s14 = int_to_ptr.hbm [resolvable:$true] %s170_s14 }
  0x10   :  { %v80_v5 = vld [vmem:[#allocation7 + $0x50] sm:$0xff]  ;;  %v79_v6 = vld [vmem:[#allocation7 + $0x48] sm:$0xff]  ;;  %v78_v7 = vld [vmem:[#allocation7 + $0x40] sm:$0xff] }
  0x11   :  { %95 = vmatpush.msra.mxu0 %v84_v1  ;;  %185 = vmatpush.msra.mxu1 %v84_v1  ;;  %v77_v8 = vld [vmem:[#allocation7 + $0x38] sm:$0xff]  ;;  %v76_v9 = vld [vmem:[#allocation7 + $0x30] sm:$0xff]  ;;  %v75_v10 = vld [vmem:[#allocation7 + $0x28] sm:$0xff] }
  0x12   :  { %v74_v11 = vld [vmem:[#allocation7 + $0x20] sm:$0xff]  ;;  %v73_v12 = vld [vmem:[#allocation7 + $0x18] sm:$0xff]  ;;  %v72_v13 = vld [vmem:[#allocation7 + $0x10] sm:$0xff] }
  0x13   :  { %96 = vmatpush.msra.mxu0 %v83_v2  ;;  %186 = vmatpush.msra.mxu1 %v83_v2  ;;  %v71_v14 = vld [vmem:[#allocation7 + $0x8] sm:$0xff]  ;;  %v70_v15 = vld [vmem:[#allocation7] sm:$0xff]  ;;  %v86_v19 = vld [vmem:[#allocation5] sm:$0xff] }
  0x14   :  { %v68_v16 = vld [vmem:[#allocation2] sm:$0xff]  ;;  %v69_v17 = vld [vmem:[#allocation2 + $0x8] sm:$0xff]  ;;  %v87_v21 = vld [vmem:[#allocation5 + $0x8] sm:$0xff] }
  0x15   :  { %97 = vmatpush.msra.mxu0 %v82_v3  ;;  %187 = vmatpush.msra.mxu1 %v82_v3  ;;  %v207_v18 = vld [vmem:[%s387_s3] ss:$0 sm:$0xff]  ;;  %v210_v30 = vpop.eup %209 }
  0x16   :  { %v92_v20 = vadd.f32 %v207_v18, %v86_v19  ;;  %v93_v24 = vadd.f32 %v207_v18, %v87_v21  ;;  %v124_v31 = vmul.f32 128.0, %v210_v30  ;;  %vm128_vm0 = vweird.f32 %v210_v30  ;;  %v208_v50 = vld [vmem:[%s388_s4] ss:$0 sm:$0xff] }
  0x17   :  { %98 = vmatpush.msra.mxu0 %v81_v4  ;;  %188 = vmatpush.msra.mxu1 %v81_v4 }
  0x18   :  { %v125_v32 = vsub.f32 1.0, %v124_v31 }
  0x19   :  { %99 = vmatpush.msra.mxu0 %v80_v5  ;;  %189 = vmatpush.msra.mxu1 %v80_v5 }
  0x1a   :  { %v126_v33 = vmul.f32 %v210_v30, %v125_v32 }
  0x1b   :  { %100 = vmatpush.msra.mxu0 %v79_v6  ;;  %190 = vmatpush.msra.mxu1 %v79_v6 }
  0x1c   :  { %v127_v34 = vadd.f32 %v210_v30, %v126_v33 }
  0x1d   :  { %101 = vmatpush.msra.mxu0 %v78_v7  ;;  %191 = vmatpush.msra.mxu1 %v78_v7 }
  0x1e   :  { %v129_v35 = vsel %vm128_vm0, %v210_v30, %v127_v34 }
  0x1f   :  { %102 = vmatpush.msra.mxu0 %v77_v8  ;;  %192 = vmatpush.msra.mxu1 %v77_v8 }
  0x21   :  { %103 = vmatpush.msra.mxu0 %v76_v9  ;;  %193 = vmatpush.msra.mxu1 %v76_v9 }
  0x23   :  { %104 = vmatpush.msra.mxu0 %v75_v10  ;;  %194 = vmatpush.msra.mxu1 %v75_v10 }
  0x25   :  { %105 = vmatpush.msra.mxu0 %v74_v11  ;;  %195 = vmatpush.msra.mxu1 %v74_v11 }
  0x27   :  { %106 = vmatpush.msra.mxu0 %v73_v12  ;;  %196 = vmatpush.msra.mxu1 %v73_v12 }
  0x29   :  { %107 = vmatpush.msra.mxu0 %v72_v13  ;;  %197 = vmatpush.msra.mxu1 %v72_v13 }
  0x2b   :  { %108 = vmatpush.msra.mxu0 %v71_v14  ;;  %198 = vmatpush.msra.mxu1 %v71_v14 }
  0x2d   :  { %109 = vmatpush.msra.mxu0 %v70_v15  ;;  %199 = vmatpush.msra.mxu1 %v70_v15 }
  0x2e   :  { %110 = vmatmul.f32.vlgmr.msra.gmra.mxu0 %v68_v16  ;;  %113 = vmatmul.f32.vlgmr.msra.gmra.mxu1 %v69_v17 }
  0xab   :  { %v111_v22 = vpop.f32.mrf.mxu0  ;;  %v114_v25 = vpop.f32.mrf.mxu1 }
  0xac   :  { %v112_v23 = vadd.f32 %v111_v22, %v92_v20  ;;  %v115_v27 = vadd.f32 %v114_v25, %v93_v24 }
  0xae   :  { %v117_v26 = vmul.f32 %v112_v23, %v112_v23  ;;  %v118_v28 = vmul.f32 %v115_v27, %v115_v27 }
  0xb0   :  { %119 = vadd.xlane.f32.xlu0 %v117_v26 }
  0xb8   :  { %121 = vadd.xlane.f32.xlu0 %v118_v28 }
 0x123   :  { %v120_v36 = vpop.xlane.xlu0 %119 }
 0x124   :  { %v130_v37 = vmul.f32 %v129_v35, %v120_v36 }
 0x126   :  { %v132_v38 = vadd.f32 1e-05, %v130_v37 }
 0x128   :  { %211 = vrsqrt.f32 %v132_v38  ;;  %vm140_vm2 = vweird.f32 %v132_v38 }
 0x12b   :  { %v122_v39 = vpop.xlane.xlu0 %121 }
 0x12c   :  { %v131_v40 = vmul.f32 %v129_v35, %v122_v39 }
 0x12e   :  { %v212_v41 = vpop.eup %211  ;;  %v133_v42 = vadd.f32 1e-05, %v131_v40 }
 0x12f   :  { %v135_v43 = vmul.f32 %v212_v41, %v132_v38  ;;  %vm141_vm1 = vweird.f32 %v212_v41 }
 0x130   :  { %213 = vrsqrt.f32 %v133_v42  ;;  %vm142_vm3 = vmor %vm140_vm2, %vm141_vm1  ;;  %vm150_vm5 = vweird.f32 %v133_v42 }
 0x131   :  { %v136_v44 = vmul.f32 %v212_v41, %v135_v43 }
 0x133   :  { %v137_v45 = vmul.f32 0.5, %v136_v44 }
 0x135   :  { %v138_v46 = vsub.f32 1.5, %v137_v45 }
 0x136   :  { %v214_v47 = vpop.eup %213 }
 0x137   :  { %v139_v48 = vmul.f32 %v212_v41, %v138_v46  ;;  %v145_v49 = vmul.f32 %v214_v47, %v133_v42  ;;  %vm151_vm4 = vweird.f32 %v214_v47 }
 0x138   :  { %vm152_vm6 = vmor %vm150_vm5, %vm151_vm4 }
 0x139   :  { %v143_v51 = vsel %vm142_vm3, %v212_v41, %v139_v48  ;;  %v146_v52 = vmul.f32 %v214_v47, %v145_v49 }
 0x13a   :  { %v154_v53 = vmul.f32 %v143_v51, %v112_v23 }
 0x13b   :  { %v147_v54 = vmul.f32 0.5, %v146_v52 }
 0x13c   :  { %v160_v55 = vmul.f32 %v208_v50, %v154_v53 }
 0x13d   :  { %v148_v56 = vsub.f32 1.5, %v147_v54 }
 0x13e   :  { %162 = vst [vmem:[#allocation8] sm:$0xff] %v160_v55 }
 0x13f   :  { %v149_v57 = vmul.f32 %v214_v47, %v148_v56 }
 0x141   :  { %v153_v58 = vsel %vm152_vm6, %v214_v47, %v149_v57 }
 0x142   :  { %v155_v59 = vmul.f32 %v153_v58, %v115_v27 }
 0x144   :  { %v161_v60 = vmul.f32 %v208_v50, %v155_v59 }
 0x146   :  { %163 = vst [vmem:[#allocation8 + $0x8] sm:$0xff] %v161_v60 }
 0x147   :  { %176 = dma.vmem_to_hbm [thread:$0]  %s169_s11, 256, %s171_s14, [#allocation4], %s318_s26, %s318_s26, %s319_s27  }
 0x148   :  { %315 = dma.done.wait [#allocation4], 256  }
 0x149   :  { %316 = vsyncadd [#allocation4], 4294967040 }
 0x14a   :  { %181 = vsyncpa [#allocation3], 1 }
 0x14b   :  { %182 = vsyncpa [#allocation6], 1 }
 0x14c   :  { %183 = vsyncpa [#allocation4], 1 }

</bundles_post_ra>
